<compile_context>
chip_gen: v7x
topology: tpu7x:2x2x1
jax: 0.10.0
libtpu: 0.0.40
codegen_flags: <defaults>
</compile_context>

<pallas_src>
import jax
import jax.numpy as jnp
from jax import lax
from jax.experimental import pallas as pl
from jax.experimental.pallas import tpu as pltpu


_SUB = 8  # batch sub-chunk (sublanes) processed per inner-loop iteration


# ------------------------- quaternion / octonion helpers --------------------

def _qmult(sa, xa, ya, za, sb, xb, yb, zb):
    A = sa * sb - xa * xb - ya * yb - za * zb
    B = sa * xb + sb * xa + ya * zb - yb * za
    C = sa * yb + sb * ya + za * xb - zb * xa
    D = sa * zb + sb * za + xa * yb - xb * ya
    return A, B, C, D


def _qstar(a, b, c, d):
    return a, -b, -c, -d


def _omult(a1, a2, a3, a4, b1, b2, b3, b4,
           c1, c2, c3, c4, d1, d2, d3, d4):
    d1s, d2s, d3s, d4s = _qstar(d1, d2, d3, d4)
    c1s, c2s, c3s, c4s = _qstar(c1, c2, c3, c4)
    o1, o2, o3, o4 = _qmult(a1, a2, a3, a4, c1, c2, c3, c4)
    o1b, o2b, o3b, o4b = _qmult(d1s, d2s, d3s, d4s, b1, b2, b3, b4)
    o5, o6, o7, o8 = _qmult(d1, d2, d3, d4, a1, a2, a3, a4)
    o5b, o6b, o7b, o8b = _qmult(b1, b2, b3, b4, c1s, c2s, c3s, c4s)
    return (o1 - o1b, o2 - o2b, o3 - o3b, o4 - o4b,
            o5 + o5b, o6 + o6b, o7 + o7b, o8 + o8b)


# ------------------------------- Pallas kernel ------------------------------

def octonion_partial_kernel(eh_ref, et_ref, r_ref, y_ref, sp_ref, reg_ref):
    bt = eh_ref.shape[1]
    hd = eh_ref.shape[2]
    # Static lane chunks of <= 128 so every live value inside the per-chunk
    # elementwise DAG is ~1 vreg.
    lane_chunks = [(s, min(128, hd - s)) for s in range(0, hd, 128)]

    def chunk(ci, carry):
        sp_acc, reg_acc = carry
        row = pl.multiple_of(ci * _SUB, _SUB)
        bs = pl.ds(row, _SUB)

        score_row = jnp.zeros((_SUB, 1), jnp.float32)
        reg_row = jnp.zeros((_SUB, 1), jnp.float32)

        for ls, lw in lane_chunks:
            hs = pl.ds(ls, lw)

            # relation components (un-normalized) + elementwise inverse norm.
            r = [r_ref[k, bs, hs] for k in range(8)]
            ss = r[0] * r[0]
            for k in range(1, 8):
                ss = ss + r[k] * r[k]
            # Guard: all-zero (padded) slots -> inv = 1; their score / reg
            # contributions are zero anyway (h, t are zero-padded).
            inv = lax.rsqrt(jnp.where(ss > 0.0, ss, 1.0))

            h = [eh_ref[k, bs, hs] for k in range(8)]
            reg = h[0] * h[0]
            for k in range(1, 8):
                reg = reg + h[k] * h[k]

            a1, a2, a3, a4 = h[0], h[1], h[2], h[3]
            b1, b2, b3, b4 = h[4], h[5], h[6], h[7]
            c1, c2, c3, c4 = r[0], r[1], r[2], r[3]
            d1, d2, d3, d4 = r[4], r[5], r[6], r[7]

            # _omult(head, r) fused with the tail dot.  r stays un-normalized;
            # the elementwise 1/|r| is applied once to score_r below (the
            # octonion product is linear in r).
            o1, o2, o3, o4 = _qmult(a1, a2, a3, a4, c1, c2, c3, c4)
            p1, p2, p3, p4 = _qmult(d1, -d2, -d3, -d4, b1, b2, b3, b4)  # qmult(d*, b)
            score_r = None
            for k, ok in enumerate((o1 - p1, o2 - p2, o3 - p3, o4 - p4)):
                tk = et_ref[k, bs, hs]
                term = ok * tk
                score_r = term if score_r is None else score_r + term
                reg = reg + tk * tk

            o5, o6, o7, o8 = _qmult(d1, d2, d3, d4, a1, a2, a3, a4)
            p5, p6, p7, p8 = _qmult(b1, b2, b3, b4, c1, -c2, -c3, -c4)  # qmult(b, c*)
            for k, ok in zip(range(4, 8), (o5 + p5, o6 + p6, o7 + p7, o8 + p8)):
                tk = et_ref[k, bs, hs]
                score_r = score_r + ok * tk
                reg = reg + tk * tk

            score_row = score_row + jnp.sum(score_r * inv, axis=-1, keepdims=True)
            reg_row = reg_row + jnp.sum(reg, axis=-1, keepdims=True)

        score = -score_row                                    # (_SUB, 1)
        yv = y_ref[bs, :]                                     # (_SUB, 1)
        x = score * yv
        # Numerically stable softplus; |y| doubles as the batch-padding mask
        # (real labels are +/-1, padded rows carry y == 0).
        sp = jnp.maximum(x, 0.0) + jnp.log(1.0 + jnp.exp(-jnp.abs(x)))
        return sp_acc + sp * jnp.abs(yv), reg_acc + reg_row

    init = (jnp.zeros((_SUB, 1), jnp.float32),
            jnp.zeros((_SUB, 1), jnp.float32))
    sp_acc, reg_acc = lax.fori_loop(0, bt // _SUB, chunk, init)

    sp_ref[0] = sp_acc
    reg_ref[0] = reg_acc
    # TODO(synk): regul2 (relation-norm regularizer) is computed in the
    # PyTorch forward but never used by loss(); intentionally omitted.


# --------------------------------- wrapper ----------------------------------

def octonion_loss(eh, et, rel, y, lmbda, *, batch_tile=None):
    """eh, et, rel: [8, B, H] float32; y: [B] or [B, 1]. Returns scalar loss."""
    comp, B, H = eh.shape
    assert comp == 8 and et.shape == eh.shape and rel.shape == eh.shape
    eh = eh.astype(jnp.float32)
    et = et.astype(jnp.float32)
    rel = rel.astype(jnp.float32)
    y = jnp.asarray(y, jnp.float32).reshape(B, 1)

    def ceil8(x):
        return ((x + 7) // 8) * 8

    # VMEM bytes per batch row across the 3 double-buffered (8, Bt, H) input
    # tiles (lane-padded to 128 inside VMEM).
    h_vmem = max(128, ((H + 127) // 128) * 128)
    bytes_per_row = 3 * 2 * 8 * h_vmem * 4

    try:
        info = pltpu.get_tpu_info()
        vmem_bytes = int(getattr(info, "vmem_capacity_bytes", 0))
    except Exception:
        vmem_bytes = 0
    if vmem_bytes < (32 << 20):
        vmem_bytes = 64 << 20                       # conservative fallback
    vmem_limit = min(int(vmem_bytes * 0.9), 112 << 20)
    tile_budget = min(int(vmem_bytes * 0.55), 44 << 20)   # v7x-safe cap

    if batch_tile is None:
        Bt = max(8, min(2048, (tile_budget // bytes_per_row) // 8 * 8))
        Bt = max(8, min(Bt, ceil8(B)))
        if B > 8:   # keep >= 2 grid steps so v7x's 2 TensorCores both get work
            Bt = max(8, min(Bt, ceil8(-(-B // 2))))
    else:
        Bt = max(8, (batch_tile // 8) * 8)
        Bt = max(8, min(Bt, ceil8(B)))

    Bp = ((B + Bt - 1) // Bt) * Bt
    G = Bp // Bt
    pad_b = Bp - B

    # Only pad when actually needed (no extra HBM pass in the aligned case).
    # Padded rows are all-zero; the in-kernel rsqrt guard + |y| mask keep them
    # inert.  The hidden dim is never padded (block last dim == array dim).
    if pad_b:
        pad3 = ((0, 0), (0, pad_b), (0, 0))
        eh = jnp.pad(eh, pad3)
        et = jnp.pad(et, pad3)
        rel = jnp.pad(rel, pad3)
        y = jnp.pad(y, ((0, pad_b), (0, 0)))

    emb_spec = pl.BlockSpec((8, Bt, H), lambda i: (0, i, 0))
    y_spec = pl.BlockSpec((Bt, 1), lambda i: (i, 0))
    part_spec = pl.BlockSpec((1, _SUB, 1), lambda i: (i, 0, 0))

    sp_parts, reg_parts = pl.pallas_call(
        octonion_partial_kernel,
        out_shape=(jax.ShapeDtypeStruct((G, _SUB, 1), jnp.float32),
                   jax.ShapeDtypeStruct((G, _SUB, 1), jnp.float32)),
        grid_spec=pltpu.PrefetchScalarGridSpec(
            num_scalar_prefetch=0,
            grid=(G,),
            in_specs=[emb_spec, emb_spec, emb_spec, y_spec],
            out_specs=(part_spec, part_spec),
        ),
        compiler_params=pltpu.CompilerParams(
            dimension_semantics=("parallel",),
            vmem_limit_bytes=vmem_limit),
        cost_estimate=pl.CostEstimate(
            flops=210 * Bp * H,
            transcendentals=Bp * H + 2 * Bp,
            bytes_accessed=(3 * 8 * Bp * H + Bp + 2 * G * _SUB) * 4),
    )(eh, et, rel, y)

    sp_sum = jnp.sum(sp_parts)
    sq_sum = jnp.sum(reg_parts)
    # mean(softplus(score*y)) + lmbda * sum_k mean(e_k^2)
    #   (sum of 16 per-component means == total sum / (B*H))
    return sp_sum / B + lmbda * sq_sum / (B * H)


# ------------------------------ pure-JAX reference --------------------------

def reference_loss(eh, et, rel, y, lmbda):
    """Mirrors the PyTorch OctonionE forward/loss. y: [B]."""
    h = [eh[k] for k in range(8)]
    t = [et[k] for k in range(8)]
    r = [rel[k] for k in range(8)]
    denom = jnp.sqrt(sum(rk * rk for rk in r))
    r = [rk / denom for rk in r]
    o = _omult(*h, *r)
    score = -jnp.sum(sum(ok * tk for ok, tk in zip(o, t)), axis=-1)   # (B,)
    sp = jnp.mean(jax.nn.softplus(score * y))
    regul = sum(jnp.mean(x * x) for x in h) + sum(jnp.mean(x * x) for x in t)
    return sp + lmbda * regul


# ----------------------------------- main ------------------------------------

if __name__ == "__main__":
    key = jax.random.PRNGKey(0)

    # synthetic config (mirrors OctonionE.__init__ shapes)
    ent_total = 10
    rel_total = 5
    hidden = 32
    batch = 8
    lmbda = 0.1

    def xavier_uniform(k, shape):
        fan_out, fan_in = shape
        bound = jnp.sqrt(6.0 / (fan_in + fan_out))
        return jax.random.uniform(k, shape, jnp.float32, -bound, bound)

    keys = jax.random.split(key, 20)
    emb_w = jnp.stack([xavier_uniform(keys[i], (ent_total, hidden))
                       for i in range(8)])              # [8, entTotal, H]
    rel_w = jnp.stack([xavier_uniform(keys[8 + i], (rel_total, hidden))
                       for i in range(8)])              # [8, relTotal, H]

    batch_h = jax.random.randint(keys[16], (batch,), 0, ent_total)
    batch_t = jax.random.randint(keys[17], (batch,), 0, ent_total)
    batch_r = jax.random.randint(keys[18], (batch,), 0, rel_total)
    batch_y = jnp.where(jax.random.bernoulli(keys[19], 0.5, (batch,)),
                        1.0, -1.0).astype(jnp.float32)

    # Embedding lookups stay in plain JAX (glue).
    # TODO(synk): optional further win — fuse the gathers into the kernel via
    # scalar-prefetched indices + manual DMA row gathers (halves HBM traffic).
    eh = emb_w[:, batch_h, :]          # [8, B, H]
    et = emb_w[:, batch_t, :]          # [8, B, H]
    rr = rel_w[:, batch_r, :]          # [8, B, H]

    loss = jax.block_until_ready(octonion_loss(eh, et, rr, batch_y, lmbda))
    ref = reference_loss(eh, et, rr, batch_y, lmbda)
    assert jnp.allclose(loss, ref, rtol=1e-5, atol=1e-5), (loss, ref)

    # Secondary check: exercise the grid (>1 step), batch padding, and a
    # hidden size that is not a multiple of 128.
    k2 = jax.random.split(jax.random.PRNGKey(1), 4)
    B2, H2 = 13, 40
    eh2 = jax.random.normal(k2[0], (8, B2, H2), jnp.float32) * 0.3
    et2 = jax.random.normal(k2[1], (8, B2, H2), jnp.float32) * 0.3
    rr2 = jax.random.normal(k2[2], (8, B2, H2), jnp.float32) * 0.3
    y2b = jnp.where(jax.random.bernoulli(k2[3], 0.5, (B2,)),
                    1.0, -1.0).astype(jnp.float32)
    loss2 = jax.block_until_ready(
        octonion_loss(eh2, et2, rr2, y2b, lmbda, batch_tile=8))
    ref2 = reference_loss(eh2, et2, rr2, y2b, lmbda)
    assert jnp.allclose(loss2, ref2, rtol=1e-5, atol=1e-5), (loss2, ref2)

    print("KERNEL_OK")
</pallas_src>

<mosaic_0001>
module attributes {stable_mosaic.version = 11 : i64} {
  func.func @octonion_partial_kernel(%arg0: i32, %arg1: memref<8x8x32xf32, #tpu.memory_space<vmem>>, %arg2: memref<8x8x32xf32, #tpu.memory_space<vmem>>, %arg3: memref<8x8x32xf32, #tpu.memory_space<vmem>>, %arg4: memref<8x1xf32, #tpu.memory_space<vmem>>, %arg5: memref<1x8x1xf32, #tpu.memory_space<vmem>>, %arg6: memref<1x8x1xf32, #tpu.memory_space<vmem>>) attributes {dimension_semantics = [#tpu.dimension_semantics<parallel>], iteration_bounds = array<i64: 1>, scalar_prefetch = 0 : i64, scratch_operands = 0 : i64, tpu.core_type = #tpu.core_type<tc>, window_params = [{transform_indices = @transform_0, window_bounds = array<i64: 8, 8, 32>}, {transform_indices = @transform_1, window_bounds = array<i64: 8, 8, 32>}, {transform_indices = @transform_2, window_bounds = array<i64: 8, 8, 32>}, {transform_indices = @transform_3, window_bounds = array<i64: 8, 1>}, {transform_indices = @transform_4, window_bounds = array<i64: 1, 8, 1>}, {transform_indices = @transform_5, window_bounds = array<i64: 1, 8, 1>}]} {
    %cst = arith.constant 0.000000e+00 : f32
    %0 = vector.broadcast %cst : f32 to vector<8x1xf32>
    %cst_0 = arith.constant 0.000000e+00 : f32
    %1 = vector.broadcast %cst_0 : f32 to vector<8x1xf32>
    %c0_i32 = arith.constant 0 : i32
    %c8_i32 = arith.constant 8 : i32
    %2 = arith.muli %c0_i32, %c8_i32 : i32
    %3 = tpu.assume_multiple %2, 8 : i32
    %cst_1 = arith.constant 0.000000e+00 : f32
    %4 = vector.broadcast %cst_1 : f32 to vector<8x1xf32>
    %cst_2 = arith.constant 0.000000e+00 : f32
    %5 = vector.broadcast %cst_2 : f32 to vector<8x1xf32>
    %c0 = arith.constant 0 : index
    %6 = arith.index_cast %3 : i32 to index
    %c0_3 = arith.constant 0 : index
    %7 = vector.load %arg3[%c0, %6, %c0_3] : memref<8x8x32xf32, #tpu.memory_space<vmem>>, vector<1x8x32xf32>
    %8 = vector.shape_cast %7 : vector<1x8x32xf32> to vector<8x32xf32>
    %c1 = arith.constant 1 : index
    %9 = arith.index_cast %3 : i32 to index
    %c0_4 = arith.constant 0 : index
    %10 = vector.load %arg3[%c1, %9, %c0_4] : memref<8x8x32xf32, #tpu.memory_space<vmem>>, vector<1x8x32xf32>
    %11 = vector.shape_cast %10 : vector<1x8x32xf32> to vector<8x32xf32>
    %c2 = arith.constant 2 : index
    %12 = arith.index_cast %3 : i32 to index
    %c0_5 = arith.constant 0 : index
    %13 = vector.load %arg3[%c2, %12, %c0_5] : memref<8x8x32xf32, #tpu.memory_space<vmem>>, vector<1x8x32xf32>
    %14 = vector.shape_cast %13 : vector<1x8x32xf32> to vector<8x32xf32>
    %c3 = arith.constant 3 : index
    %15 = arith.index_cast %3 : i32 to index
    %c0_6 = arith.constant 0 : index
    %16 = vector.load %arg3[%c3, %15, %c0_6] : memref<8x8x32xf32, #tpu.memory_space<vmem>>, vector<1x8x32xf32>
    %17 = vector.shape_cast %16 : vector<1x8x32xf32> to vector<8x32xf32>
    %c4 = arith.constant 4 : index
    %18 = arith.index_cast %3 : i32 to index
    %c0_7 = arith.constant 0 : index
    %19 = vector.load %arg3[%c4, %18, %c0_7] : memref<8x8x32xf32, #tpu.memory_space<vmem>>, vector<1x8x32xf32>
    %20 = vector.shape_cast %19 : vector<1x8x32xf32> to vector<8x32xf32>
    %c5 = arith.constant 5 : index
    %21 = arith.index_cast %3 : i32 to index
    %c0_8 = arith.constant 0 : index
    %22 = vector.load %arg3[%c5, %21, %c0_8] : memref<8x8x32xf32, #tpu.memory_space<vmem>>, vector<1x8x32xf32>
    %23 = vector.shape_cast %22 : vector<1x8x32xf32> to vector<8x32xf32>
    %c6 = arith.constant 6 : index
    %24 = arith.index_cast %3 : i32 to index
    %c0_9 = arith.constant 0 : index
    %25 = vector.load %arg3[%c6, %24, %c0_9] : memref<8x8x32xf32, #tpu.memory_space<vmem>>, vector<1x8x32xf32>
    %26 = vector.shape_cast %25 : vector<1x8x32xf32> to vector<8x32xf32>
    %c7 = arith.constant 7 : index
    %27 = arith.index_cast %3 : i32 to index
    %c0_10 = arith.constant 0 : index
    %28 = vector.load %arg3[%c7, %27, %c0_10] : memref<8x8x32xf32, #tpu.memory_space<vmem>>, vector<1x8x32xf32>
    %29 = vector.shape_cast %28 : vector<1x8x32xf32> to vector<8x32xf32>
    %30 = arith.mulf %8, %8 : vector<8x32xf32>
    %31 = arith.mulf %11, %11 : vector<8x32xf32>
    %32 = arith.addf %30, %31 : vector<8x32xf32>
    %33 = arith.mulf %14, %14 : vector<8x32xf32>
    %34 = arith.addf %32, %33 : vector<8x32xf32>
    %35 = arith.mulf %17, %17 : vector<8x32xf32>
    %36 = arith.addf %34, %35 : vector<8x32xf32>
    %37 = arith.mulf %20, %20 : vector<8x32xf32>
    %38 = arith.addf %36, %37 : vector<8x32xf32>
    %39 = arith.mulf %23, %23 : vector<8x32xf32>
    %40 = arith.addf %38, %39 : vector<8x32xf32>
    %41 = arith.mulf %26, %26 : vector<8x32xf32>
    %42 = arith.addf %40, %41 : vector<8x32xf32>
    %43 = arith.mulf %29, %29 : vector<8x32xf32>
    %44 = arith.addf %42, %43 : vector<8x32xf32>
    %cst_11 = arith.constant 0.000000e+00 : f32
    %45 = vector.broadcast %cst_11 : f32 to vector<8x32xf32>
    %46 = arith.cmpf ogt, %44, %45 : vector<8x32xf32>
    %cst_12 = arith.constant 1.000000e+00 : f32
    %47 = vector.broadcast %cst_12 : f32 to vector<8x32xf32>
    %48 = arith.select %46, %44, %47 : vector<8x32xi1>, vector<8x32xf32>
    %49 = math.rsqrt %48 : vector<8x32xf32>
    %c0_13 = arith.constant 0 : index
    %50 = arith.index_cast %3 : i32 to index
    %c0_14 = arith.constant 0 : index
    %51 = vector.load %arg1[%c0_13, %50, %c0_14] : memref<8x8x32xf32, #tpu.memory_space<vmem>>, vector<1x8x32xf32>
    %52 = vector.shape_cast %51 : vector<1x8x32xf32> to vector<8x32xf32>
    %c1_15 = arith.constant 1 : index
    %53 = arith.index_cast %3 : i32 to index
    %c0_16 = arith.constant 0 : index
    %54 = vector.load %arg1[%c1_15, %53, %c0_16] : memref<8x8x32xf32, #tpu.memory_space<vmem>>, vector<1x8x32xf32>
    %55 = vector.shape_cast %54 : vector<1x8x32xf32> to vector<8x32xf32>
    %c2_17 = arith.constant 2 : index
    %56 = arith.index_cast %3 : i32 to index
    %c0_18 = arith.constant 0 : index
    %57 = vector.load %arg1[%c2_17, %56, %c0_18] : memref<8x8x32xf32, #tpu.memory_space<vmem>>, vector<1x8x32xf32>
    %58 = vector.shape_cast %57 : vector<1x8x32xf32> to vector<8x32xf32>
    %c3_19 = arith.constant 3 : index
    %59 = arith.index_cast %3 : i32 to index
    %c0_20 = arith.constant 0 : index
    %60 = vector.load %arg1[%c3_19, %59, %c0_20] : memref<8x8x32xf32, #tpu.memory_space<vmem>>, vector<1x8x32xf32>
    %61 = vector.shape_cast %60 : vector<1x8x32xf32> to vector<8x32xf32>
    %c4_21 = arith.constant 4 : index
    %62 = arith.index_cast %3 : i32 to index
    %c0_22 = arith.constant 0 : index
    %63 = vector.load %arg1[%c4_21, %62, %c0_22] : memref<8x8x32xf32, #tpu.memory_space<vmem>>, vector<1x8x32xf32>
    %64 = vector.shape_cast %63 : vector<1x8x32xf32> to vector<8x32xf32>
    %c5_23 = arith.constant 5 : index
    %65 = arith.index_cast %3 : i32 to index
    %c0_24 = arith.constant 0 : index
    %66 = vector.load %arg1[%c5_23, %65, %c0_24] : memref<8x8x32xf32, #tpu.memory_space<vmem>>, vector<1x8x32xf32>
    %67 = vector.shape_cast %66 : vector<1x8x32xf32> to vector<8x32xf32>
    %c6_25 = arith.constant 6 : index
    %68 = arith.index_cast %3 : i32 to index
    %c0_26 = arith.constant 0 : index
    %69 = vector.load %arg1[%c6_25, %68, %c0_26] : memref<8x8x32xf32, #tpu.memory_space<vmem>>, vector<1x8x32xf32>
    %70 = vector.shape_cast %69 : vector<1x8x32xf32> to vector<8x32xf32>
    %c7_27 = arith.constant 7 : index
    %71 = arith.index_cast %3 : i32 to index
    %c0_28 = arith.constant 0 : index
    %72 = vector.load %arg1[%c7_27, %71, %c0_28] : memref<8x8x32xf32, #tpu.memory_space<vmem>>, vector<1x8x32xf32>
    %73 = vector.shape_cast %72 : vector<1x8x32xf32> to vector<8x32xf32>
    %74 = arith.mulf %52, %52 : vector<8x32xf32>
    %75 = arith.mulf %55, %55 : vector<8x32xf32>
    %76 = arith.addf %74, %75 : vector<8x32xf32>
    %77 = arith.mulf %58, %58 : vector<8x32xf32>
    %78 = arith.addf %76, %77 : vector<8x32xf32>
    %79 = arith.mulf %61, %61 : vector<8x32xf32>
    %80 = arith.addf %78, %79 : vector<8x32xf32>
    %81 = arith.mulf %64, %64 : vector<8x32xf32>
    %82 = arith.addf %80, %81 : vector<8x32xf32>
    %83 = arith.mulf %67, %67 : vector<8x32xf32>
    %84 = arith.addf %82, %83 : vector<8x32xf32>
    %85 = arith.mulf %70, %70 : vector<8x32xf32>
    %86 = arith.addf %84, %85 : vector<8x32xf32>
    %87 = arith.mulf %73, %73 : vector<8x32xf32>
    %88 = arith.addf %86, %87 : vector<8x32xf32>
    %89 = arith.mulf %52, %8 : vector<8x32xf32>
    %90 = arith.mulf %55, %11 : vector<8x32xf32>
    %91 = arith.subf %89, %90 : vector<8x32xf32>
    %92 = arith.mulf %58, %14 : vector<8x32xf32>
    %93 = arith.subf %91, %92 : vector<8x32xf32>
    %94 = arith.mulf %61, %17 : vector<8x32xf32>
    %95 = arith.subf %93, %94 : vector<8x32xf32>
    %96 = arith.mulf %52, %11 : vector<8x32xf32>
    %97 = arith.mulf %8, %55 : vector<8x32xf32>
    %98 = arith.addf %96, %97 : vector<8x32xf32>
    %99 = arith.mulf %58, %17 : vector<8x32xf32>
    %100 = arith.addf %98, %99 : vector<8x32xf32>
    %101 = arith.mulf %14, %61 : vector<8x32xf32>
    %102 = arith.subf %100, %101 : vector<8x32xf32>
    %103 = arith.mulf %52, %14 : vector<8x32xf32>
    %104 = arith.mulf %8, %58 : vector<8x32xf32>
    %105 = arith.addf %103, %104 : vector<8x32xf32>
    %106 = arith.mulf %61, %11 : vector<8x32xf32>
    %107 = arith.addf %105, %106 : vector<8x32xf32>
    %108 = arith.mulf %17, %55 : vector<8x32xf32>
    %109 = arith.subf %107, %108 : vector<8x32xf32>
    %110 = arith.mulf %52, %17 : vector<8x32xf32>
    %111 = arith.mulf %8, %61 : vector<8x32xf32>
    %112 = arith.addf %110, %111 : vector<8x32xf32>
    %113 = arith.mulf %55, %14 : vector<8x32xf32>
    %114 = arith.addf %112, %113 : vector<8x32xf32>
    %115 = arith.mulf %11, %58 : vector<8x32xf32>
    %116 = arith.subf %114, %115 : vector<8x32xf32>
    %cst_29 = arith.constant 0.000000e+00 : f32
    %117 = vector.broadcast %cst_29 : f32 to vector<8x32xf32>
    %118 = arith.subf %117, %23 : vector<8x32xf32>
    %cst_30 = arith.constant 0.000000e+00 : f32
    %119 = vector.broadcast %cst_30 : f32 to vector<8x32xf32>
    %120 = arith.subf %119, %26 : vector<8x32xf32>
    %cst_31 = arith.constant 0.000000e+00 : f32
    %121 = vector.broadcast %cst_31 : f32 to vector<8x32xf32>
    %122 = arith.subf %121, %29 : vector<8x32xf32>
    %123 = arith.mulf %20, %64 : vector<8x32xf32>
    %124 = arith.mulf %118, %67 : vector<8x32xf32>
    %125 = arith.subf %123, %124 : vector<8x32xf32>
    %126 = arith.mulf %120, %70 : vector<8x32xf32>
    %127 = arith.subf %125, %126 : vector<8x32xf32>
    %128 = arith.mulf %122, %73 : vector<8x32xf32>
    %129 = arith.subf %127, %128 : vector<8x32xf32>
    %130 = arith.mulf %20, %67 : vector<8x32xf32>
    %131 = arith.mulf %64, %118 : vector<8x32xf32>
    %132 = arith.addf %130, %131 : vector<8x32xf32>
    %133 = arith.mulf %120, %73 : vector<8x32xf32>
    %134 = arith.addf %132, %133 : vector<8x32xf32>
    %135 = arith.mulf %70, %122 : vector<8x32xf32>
    %136 = arith.subf %134, %135 : vector<8x32xf32>
    %137 = arith.mulf %20, %70 : vector<8x32xf32>
    %138 = arith.mulf %64, %120 : vector<8x32xf32>
    %139 = arith.addf %137, %138 : vector<8x32xf32>
    %140 = arith.mulf %122, %67 : vector<8x32xf32>
    %141 = arith.addf %139, %140 : vector<8x32xf32>
    %142 = arith.mulf %73, %118 : vector<8x32xf32>
    %143 = arith.subf %141, %142 : vector<8x32xf32>
    %144 = arith.mulf %20, %73 : vector<8x32xf32>
    %145 = arith.mulf %64, %122 : vector<8x32xf32>
    %146 = arith.addf %144, %145 : vector<8x32xf32>
    %147 = arith.mulf %118, %70 : vector<8x32xf32>
    %148 = arith.addf %146, %147 : vector<8x32xf32>
    %149 = arith.mulf %67, %120 : vector<8x32xf32>
    %150 = arith.subf %148, %149 : vector<8x32xf32>
    %151 = arith.subf %95, %129 : vector<8x32xf32>
    %152 = arith.subf %102, %136 : vector<8x32xf32>
    %153 = arith.subf %109, %143 : vector<8x32xf32>
    %154 = arith.subf %116, %150 : vector<8x32xf32>
    %c0_32 = arith.constant 0 : index
    %155 = arith.index_cast %3 : i32 to index
    %c0_33 = arith.constant 0 : index
    %156 = vector.load %arg2[%c0_32, %155, %c0_33] : memref<8x8x32xf32, #tpu.memory_space<vmem>>, vector<1x8x32xf32>
    %157 = vector.shape_cast %156 : vector<1x8x32xf32> to vector<8x32xf32>
    %158 = arith.mulf %151, %157 : vector<8x32xf32>
    %159 = arith.mulf %157, %157 : vector<8x32xf32>
    %160 = arith.addf %88, %159 : vector<8x32xf32>
    %c1_34 = arith.constant 1 : index
    %161 = arith.index_cast %3 : i32 to index
    %c0_35 = arith.constant 0 : index
    %162 = vector.load %arg2[%c1_34, %161, %c0_35] : memref<8x8x32xf32, #tpu.memory_space<vmem>>, vector<1x8x32xf32>
    %163 = vector.shape_cast %162 : vector<1x8x32xf32> to vector<8x32xf32>
    %164 = arith.mulf %152, %163 : vector<8x32xf32>
    %165 = arith.addf %158, %164 : vector<8x32xf32>
    %166 = arith.mulf %163, %163 : vector<8x32xf32>
    %167 = arith.addf %160, %166 : vector<8x32xf32>
    %c2_36 = arith.constant 2 : index
    %168 = arith.index_cast %3 : i32 to index
    %c0_37 = arith.constant 0 : index
    %169 = vector.load %arg2[%c2_36, %168, %c0_37] : memref<8x8x32xf32, #tpu.memory_space<vmem>>, vector<1x8x32xf32>
    %170 = vector.shape_cast %169 : vector<1x8x32xf32> to vector<8x32xf32>
    %171 = arith.mulf %153, %170 : vector<8x32xf32>
    %172 = arith.addf %165, %171 : vector<8x32xf32>
    %173 = arith.mulf %170, %170 : vector<8x32xf32>
    %174 = arith.addf %167, %173 : vector<8x32xf32>
    %c3_38 = arith.constant 3 : index
    %175 = arith.index_cast %3 : i32 to index
    %c0_39 = arith.constant 0 : index
    %176 = vector.load %arg2[%c3_38, %175, %c0_39] : memref<8x8x32xf32, #tpu.memory_space<vmem>>, vector<1x8x32xf32>
    %177 = vector.shape_cast %176 : vector<1x8x32xf32> to vector<8x32xf32>
    %178 = arith.mulf %154, %177 : vector<8x32xf32>
    %179 = arith.addf %172, %178 : vector<8x32xf32>
    %180 = arith.mulf %177, %177 : vector<8x32xf32>
    %181 = arith.addf %174, %180 : vector<8x32xf32>
    %182 = arith.mulf %20, %52 : vector<8x32xf32>
    %183 = arith.mulf %23, %55 : vector<8x32xf32>
    %184 = arith.subf %182, %183 : vector<8x32xf32>
    %185 = arith.mulf %26, %58 : vector<8x32xf32>
    %186 = arith.subf %184, %185 : vector<8x32xf32>
    %187 = arith.mulf %29, %61 : vector<8x32xf32>
    %188 = arith.subf %186, %187 : vector<8x32xf32>
    %189 = arith.mulf %20, %55 : vector<8x32xf32>
    %190 = arith.mulf %52, %23 : vector<8x32xf32>
    %191 = arith.addf %189, %190 : vector<8x32xf32>
    %192 = arith.mulf %26, %61 : vector<8x32xf32>
    %193 = arith.addf %191, %192 : vector<8x32xf32>
    %194 = arith.mulf %58, %29 : vector<8x32xf32>
    %195 = arith.subf %193, %194 : vector<8x32xf32>
    %196 = arith.mulf %20, %58 : vector<8x32xf32>
    %197 = arith.mulf %52, %26 : vector<8x32xf32>
    %198 = arith.addf %196, %197 : vector<8x32xf32>
    %199 = arith.mulf %29, %55 : vector<8x32xf32>
    %200 = arith.addf %198, %199 : vector<8x32xf32>
    %201 = arith.mulf %61, %23 : vector<8x32xf32>
    %202 = arith.subf %200, %201 : vector<8x32xf32>
    %203 = arith.mulf %20, %61 : vector<8x32xf32>
    %204 = arith.mulf %52, %29 : vector<8x32xf32>
    %205 = arith.addf %203, %204 : vector<8x32xf32>
    %206 = arith.mulf %23, %58 : vector<8x32xf32>
    %207 = arith.addf %205, %206 : vector<8x32xf32>
    %208 = arith.mulf %55, %26 : vector<8x32xf32>
    %209 = arith.subf %207, %208 : vector<8x32xf32>
    %cst_40 = arith.constant 0.000000e+00 : f32
    %210 = vector.broadcast %cst_40 : f32 to vector<8x32xf32>
    %211 = arith.subf %210, %11 : vector<8x32xf32>
    %cst_41 = arith.constant 0.000000e+00 : f32
    %212 = vector.broadcast %cst_41 : f32 to vector<8x32xf32>
    %213 = arith.subf %212, %14 : vector<8x32xf32>
    %cst_42 = arith.constant 0.000000e+00 : f32
    %214 = vector.broadcast %cst_42 : f32 to vector<8x32xf32>
    %215 = arith.subf %214, %17 : vector<8x32xf32>
    %216 = arith.mulf %64, %8 : vector<8x32xf32>
    %217 = arith.mulf %67, %211 : vector<8x32xf32>
    %218 = arith.subf %216, %217 : vector<8x32xf32>
    %219 = arith.mulf %70, %213 : vector<8x32xf32>
    %220 = arith.subf %218, %219 : vector<8x32xf32>
    %221 = arith.mulf %73, %215 : vector<8x32xf32>
    %222 = arith.subf %220, %221 : vector<8x32xf32>
    %223 = arith.mulf %64, %211 : vector<8x32xf32>
    %224 = arith.mulf %8, %67 : vector<8x32xf32>
    %225 = arith.addf %223, %224 : vector<8x32xf32>
    %226 = arith.mulf %70, %215 : vector<8x32xf32>
    %227 = arith.addf %225, %226 : vector<8x32xf32>
    %228 = arith.mulf %213, %73 : vector<8x32xf32>
    %229 = arith.subf %227, %228 : vector<8x32xf32>
    %230 = arith.mulf %64, %213 : vector<8x32xf32>
    %231 = arith.mulf %8, %70 : vector<8x32xf32>
    %232 = arith.addf %230, %231 : vector<8x32xf32>
    %233 = arith.mulf %73, %211 : vector<8x32xf32>
    %234 = arith.addf %232, %233 : vector<8x32xf32>
    %235 = arith.mulf %215, %67 : vector<8x32xf32>
    %236 = arith.subf %234, %235 : vector<8x32xf32>
    %237 = arith.mulf %64, %215 : vector<8x32xf32>
    %238 = arith.mulf %8, %73 : vector<8x32xf32>
    %239 = arith.addf %237, %238 : vector<8x32xf32>
    %240 = arith.mulf %67, %213 : vector<8x32xf32>
    %241 = arith.addf %239, %240 : vector<8x32xf32>
    %242 = arith.mulf %211, %70 : vector<8x32xf32>
    %243 = arith.subf %241, %242 : vector<8x32xf32>
    %244 = arith.addf %188, %222 : vector<8x32xf32>
    %245 = arith.addf %195, %229 : vector<8x32xf32>
    %246 = arith.addf %202, %236 : vector<8x32xf32>
    %247 = arith.addf %209, %243 : vector<8x32xf32>
    %c4_43 = arith.constant 4 : index
    %248 = arith.index_cast %3 : i32 to index
    %c0_44 = arith.constant 0 : index
    %249 = vector.load %arg2[%c4_43, %248, %c0_44] : memref<8x8x32xf32, #tpu.memory_space<vmem>>, vector<1x8x32xf32>
    %250 = vector.shape_cast %249 : vector<1x8x32xf32> to vector<8x32xf32>
    %251 = arith.mulf %244, %250 : vector<8x32xf32>
    %252 = arith.addf %179, %251 : vector<8x32xf32>
    %253 = arith.mulf %250, %250 : vector<8x32xf32>
    %254 = arith.addf %181, %253 : vector<8x32xf32>
    %c5_45 = arith.constant 5 : index
    %255 = arith.index_cast %3 : i32 to index
    %c0_46 = arith.constant 0 : index
    %256 = vector.load %arg2[%c5_45, %255, %c0_46] : memref<8x8x32xf32, #tpu.memory_space<vmem>>, vector<1x8x32xf32>
    %257 = vector.shape_cast %256 : vector<1x8x32xf32> to vector<8x32xf32>
    %258 = arith.mulf %245, %257 : vector<8x32xf32>
    %259 = arith.addf %252, %258 : vector<8x32xf32>
    %260 = arith.mulf %257, %257 : vector<8x32xf32>
    %261 = arith.addf %254, %260 : vector<8x32xf32>
    %c6_47 = arith.constant 6 : index
    %262 = arith.index_cast %3 : i32 to index
    %c0_48 = arith.constant 0 : index
    %263 = vector.load %arg2[%c6_47, %262, %c0_48] : memref<8x8x32xf32, #tpu.memory_space<vmem>>, vector<1x8x32xf32>
    %264 = vector.shape_cast %263 : vector<1x8x32xf32> to vector<8x32xf32>
    %265 = arith.mulf %246, %264 : vector<8x32xf32>
    %266 = arith.addf %259, %265 : vector<8x32xf32>
    %267 = arith.mulf %264, %264 : vector<8x32xf32>
    %268 = arith.addf %261, %267 : vector<8x32xf32>
    %c7_49 = arith.constant 7 : index
    %269 = arith.index_cast %3 : i32 to index
    %c0_50 = arith.constant 0 : index
    %270 = vector.load %arg2[%c7_49, %269, %c0_50] : memref<8x8x32xf32, #tpu.memory_space<vmem>>, vector<1x8x32xf32>
    %271 = vector.shape_cast %270 : vector<1x8x32xf32> to vector<8x32xf32>
    %272 = arith.mulf %247, %271 : vector<8x32xf32>
    %273 = arith.addf %266, %272 : vector<8x32xf32>
    %274 = arith.mulf %271, %271 : vector<8x32xf32>
    %275 = arith.addf %268, %274 : vector<8x32xf32>
    %276 = arith.mulf %273, %49 : vector<8x32xf32>
    %cst_51 = arith.constant dense<0.000000e+00> : vector<8xf32>
    %277 = vector.multi_reduction <add>, %276, %cst_51 [1] : vector<8x32xf32> to vector<8xf32>
    %278 = vector.shape_cast %277 : vector<8xf32> to vector<8x1xf32>
    %279 = arith.addf %4, %278 : vector<8x1xf32>
    %cst_52 = arith.constant dense<0.000000e+00> : vector<8xf32>
    %280 = vector.multi_reduction <add>, %275, %cst_52 [1] : vector<8x32xf32> to vector<8xf32>
    %281 = vector.shape_cast %280 : vector<8xf32> to vector<8x1xf32>
    %282 = arith.addf %5, %281 : vector<8x1xf32>
    %cst_53 = arith.constant 0.000000e+00 : f32
    %283 = vector.broadcast %cst_53 : f32 to vector<8x1xf32>
    %284 = arith.subf %283, %279 : vector<8x1xf32>
    %285 = arith.index_cast %3 : i32 to index
    %c0_54 = arith.constant 0 : index
    %286 = vector.load %arg4[%285, %c0_54] : memref<8x1xf32, #tpu.memory_space<vmem>>, vector<8x1xf32>
    %287 = arith.mulf %284, %286 : vector<8x1xf32>
    %cst_55 = arith.constant 0.000000e+00 : f32
    %288 = vector.broadcast %cst_55 : f32 to vector<8x1xf32>
    %289 = arith.maximumf %287, %288 : vector<8x1xf32>
    %290 = math.absf %287 : vector<8x1xf32>
    %cst_56 = arith.constant 0.000000e+00 : f32
    %291 = vector.broadcast %cst_56 : f32 to vector<8x1xf32>
    %292 = arith.subf %291, %290 : vector<8x1xf32>
    %293 = math.exp %292 : vector<8x1xf32>
    %cst_57 = arith.constant 1.000000e+00 : f32
    %294 = vector.broadcast %cst_57 : f32 to vector<8x1xf32>
    %295 = arith.addf %294, %293 : vector<8x1xf32>
    %296 = math.log %295 : vector<8x1xf32>
    %297 = arith.addf %289, %296 : vector<8x1xf32>
    %298 = math.absf %286 : vector<8x1xf32>
    %299 = arith.mulf %297, %298 : vector<8x1xf32>
    %300 = arith.addf %0, %299 : vector<8x1xf32>
    %301 = arith.addf %1, %282 : vector<8x1xf32>
    %c1_i32 = arith.constant 1 : i32
    %c0_58 = arith.constant 0 : index
    %c0_59 = arith.constant 0 : index
    %c0_60 = arith.constant 0 : index
    %302 = vector.load %arg5[%c0_58, %c0_59, %c0_60] : memref<1x8x1xf32, #tpu.memory_space<vmem>>, vector<1x8x1xf32>
    %303 = vector.shape_cast %302 : vector<1x8x1xf32> to vector<8x1xf32>
    %304 = vector.shape_cast %300 : vector<8x1xf32> to vector<1x8x1xf32>
    tpu.vector_store %arg5[%c0_58, %c0_59, %c0_60], %304 {strides = array<i32>} : memref<1x8x1xf32, #tpu.memory_space<vmem>>, vector<1x8x1xf32>,
    %c0_61 = arith.constant 0 : index
    %c0_62 = arith.constant 0 : index
    %c0_63 = arith.constant 0 : index
    %305 = vector.load %arg6[%c0_61, %c0_62, %c0_63] : memref<1x8x1xf32, #tpu.memory_space<vmem>>, vector<1x8x1xf32>
    %306 = vector.shape_cast %305 : vector<1x8x1xf32> to vector<8x1xf32>
    %307 = vector.shape_cast %301 : vector<8x1xf32> to vector<1x8x1xf32>
    tpu.vector_store %arg6[%c0_61, %c0_62, %c0_63], %307 {strides = array<i32>} : memref<1x8x1xf32, #tpu.memory_space<vmem>>, vector<1x8x1xf32>,
    return
  }
  func.func @transform_0(%arg0: i32) -> (i32, i32, i32) {
    %c0_i32 = arith.constant 0 : i32
    %c0_i32_0 = arith.constant 0 : i32
    %c0_i32_1 = arith.constant 0 : i32
    return %c0_i32, %arg0, %c0_i32_0 : i32, i32, i32
  }
  func.func @transform_1(%arg0: i32) -> (i32, i32, i32) {
    %c0_i32 = arith.constant 0 : i32
    %c0_i32_0 = arith.constant 0 : i32
    %c0_i32_1 = arith.constant 0 : i32
    return %c0_i32, %arg0, %c0_i32_0 : i32, i32, i32
  }
  func.func @transform_2(%arg0: i32) -> (i32, i32, i32) {
    %c0_i32 = arith.constant 0 : i32
    %c0_i32_0 = arith.constant 0 : i32
    %c0_i32_1 = arith.constant 0 : i32
    return %c0_i32, %arg0, %c0_i32_0 : i32, i32, i32
  }
  func.func @transform_3(%arg0: i32) -> (i32, i32) {
    %c0_i32 = arith.constant 0 : i32
    %c0_i32_0 = arith.constant 0 : i32
    return %arg0, %c0_i32 : i32, i32
  }
  func.func @transform_4(%arg0: i32) -> (i32, i32, i32) {
    %c0_i32 = arith.constant 0 : i32
    %c0_i32_0 = arith.constant 0 : i32
    %c0_i32_1 = arith.constant 0 : i32
    return %arg0, %c0_i32, %c0_i32_0 : i32, i32, i32
  }
  func.func @transform_5(%arg0: i32) -> (i32, i32, i32) {
    %c0_i32 = arith.constant 0 : i32
    %c0_i32_0 = arith.constant 0 : i32
    %c0_i32_1 = arith.constant 0 : i32
    return %arg0, %c0_i32, %c0_i32_0 : i32, i32, i32
  }
}

</mosaic_0001>

<bundles_post_ra>
// kernel: tpu_custom_call.1
= control target key start
LH: loop header
LB: loop body
LE: loop exit
PB: predicated region body
PF: predicated region fallthrough
CT: control target
= control target key end

     0   :  { %11 = vsyncpa [#allocation3], 0  ;;  %s750_s0 = inlined_call_operand.hbm [shape: f32[8,8,32], index: 0, kind: input, shape index: {}]   ;;  %s751_s1 = inlined_call_operand.hbm [shape: f32[8,8,32], index: 1, kind: input, shape index: {}]   ;;  %s752_s2 = inlined_call_operand.hbm [shape: f32[8,8,32], index: 2, kind: input, shape index: {}]   ;;  %s753_s3 = inlined_call_operand.vmem [shape: f32[8,1], index: 3, kind: input, shape index: {}]   ;;  %s754_s4 = inlined_call_operand.vmem [shape: f32[1,8,1], index: 4, kind: output, shape index: {0}]   ;;  %s755_s5 = inlined_call_operand.vmem [shape: f32[1,8,1], index: 5, kind: output, shape index: {1}]  }
   0x1   :  { %12 = vsyncpa [#allocation5], 0  ;;  %s443_s18 = smov [#allocation4]   ;;  %s444_s20 = smov [#allocation2]  }
   0x2   :  { %s30_s19 = sshll.u32 %s443_s18, 4  ;;  %s18_s21 = sshll.u32 %s444_s20, 4  ;;  %s31_s19 = int_to_ptr.vmem [resolvable:$true] %s30_s19  ;;  %s478_s21 = int_to_ptr.vmem [resolvable:$true] %s18_s21 }
   0x3   :  { %s373_s24 = scalar_lea.hbm %s751_s1, 1024 }
   0x4   :  { %p374_p0 = scmp.ne.s32.totalorder %s751_s1, %s373_s24  ;;  %p377_p1 = scmp.lt.u32.totalorder %s373_s24, %s751_s1 }
   0x6   :  { %p379_p2 = pnand %p377_p1, %p374_p0 }
   0x8   :  { %382 = shalt.err (!%p379_p2)
}
   0x9   :  { %s383_s29 = scalar_lea.vmem %s31_s19, 1024  ;;  %p388_p4 = scmp.lt.s32.totalorder %s31_s19, %s31_s19 }
   0xa   :  { %p384_p3 = scmp.ne.s32.totalorder %s31_s19, %s383_s29  ;;  %p389_p5 = scmp.lt.s32.totalorder %s383_s29, %s383_s29 }
   0xc   :  { %p390_p6 = por %p389_p5, %p388_p4 }
   0xe   :  { %p391_p7 = pnand %p390_p6, %p384_p3 }
  0x10   :  { %394 = shalt.err (!%p391_p7)
}
  0x11   :  { %s445_s30 = smov 128   ;;  %s446_s6 = smov 8  }
  0x12   :  { %36 = dma.hbm_to_vmem [thread:$0]  %s751_s1, 1024, %s31_s19, [#allocation5], %s445_s30, %s445_s30, %s446_s6  }
  0x13   :  { %s395_s11 = scalar_lea.hbm %s750_s0, 1024 }
  0x14   :  { %p396_p8 = scmp.ne.s32.totalorder %s750_s0, %s395_s11  ;;  %p399_p9 = scmp.lt.u32.totalorder %s395_s11, %s750_s0 }
  0x16   :  { %p401_p10 = pnand %p399_p9, %p396_p8 }
  0x18   :  { %404 = shalt.err (!%p401_p10)
}
  0x19   :  { %s405_s16 = scalar_lea.vmem %s478_s21, 1024  ;;  %p410_p12 = scmp.lt.s32.totalorder %s478_s21, %s478_s21 }
  0x1a   :  { %p406_p11 = scmp.ne.s32.totalorder %s478_s21, %s405_s16  ;;  %p411_p13 = scmp.lt.s32.totalorder %s405_s16, %s405_s16 }
  0x1c   :  { %p412_p0 = por %p411_p13, %p410_p12 }
  0x1e   :  { %p413_p1 = pnand %p412_p0, %p406_p11 }
  0x20   :  { %416 = shalt.err (!%p413_p1)
}
  0x21   :  { %24 = dma.hbm_to_vmem [thread:$0]  %s750_s0, 1024, %s478_s21, [#allocation3], %s445_s30, %s445_s30, %s446_s6  }
  0x22   :  { %s447_s18 = smov [#allocation6]   ;;  %s417_s23 = scalar_lea.hbm %s752_s2, 1024 }
  0x23   :  { %s42_s19 = sshll.u32 %s447_s18, 4  ;;  %p418_p2 = scmp.ne.s32.totalorder %s752_s2, %s417_s23  ;;  %s43_s19 = int_to_ptr.vmem [resolvable:$true] %s42_s19 }
  0x24   :  { %p421_p3 = scmp.lt.u32.totalorder %s417_s23, %s752_s2 }
  0x26   :  { %p423_p4 = pnand %p421_p3, %p418_p2 }
  0x28   :  { %426 = shalt.err (!%p423_p4)
}
  0x29   :  { %s427_s28 = scalar_lea.vmem %s43_s19, 1024  ;;  %p432_p6 = scmp.lt.s32.totalorder %s43_s19, %s43_s19 }
  0x2a   :  { %p428_p5 = scmp.ne.s32.totalorder %s43_s19, %s427_s28  ;;  %p433_p7 = scmp.lt.s32.totalorder %s427_s28, %s427_s28 }
  0x2c   :  { %p434_p8 = por %p433_p7, %p432_p6 }
  0x2e   :  { %p435_p9 = pnand %p434_p8, %p428_p5 }
  0x30   :  { %438 = shalt.err (!%p435_p9)
}
  0x31   :  { %48 = dma.hbm_to_vmem [thread:$0]  %s752_s2, 1024, %s43_s19, [#allocation5], %s445_s30, %s445_s30, %s446_s6  }
  0x32   :  { %439 = dma.done.wait [#allocation3], 1024  }
  0x33   :  { %440 = vsyncadd [#allocation3], 4294966272 }
  0x34   :  { %441 = dma.done.wait [#allocation5], 2048  }
  0x35   :  { %442 = vsyncadd [#allocation5], 4294965248  ;;  %v530_v0 = vld [vmem:[#allocation6] sm:$0xff]  ;;  %v63_v1 = vld [vmem:[#allocation6 + $0x8] sm:$0xff]  ;;  %vm303_vm1 = vcmask 261120   ;;  %vm328_vm2 = vcmask 7168  }
  0x36   :  { %v532_v2 = vld [vmem:[#allocation6 + $0x10] sm:$0xff]  ;;  %v534_v3 = vld [vmem:[#allocation6 + $0x18] sm:$0xff]  ;;  %v536_v4 = vld [vmem:[#allocation6 + $0x20] sm:$0xff]  ;;  %v82_v6 = vmul.f32 %v530_v0, %v530_v0  ;;  %v83_v7 = vmul.f32 %v63_v1, %v63_v1  ;;  %v556_v15 = vsub.f32 0.0, %v63_v1 }
  0x37   :  { %v538_v5 = vld [vmem:[#allocation6 + $0x28] sm:$0xff]  ;;  %v85_v8 = vmul.f32 %v532_v2, %v532_v2  ;;  %v544_v9 = vld [vmem:[#allocation6 + $0x30] sm:$0xff]  ;;  %v546_v10 = vld [vmem:[#allocation6 + $0x38] sm:$0xff]  ;;  %v87_v11 = vmul.f32 %v534_v3, %v534_v3  ;;  %v89_v12 = vmul.f32 %v536_v4, %v536_v4 }
  0x38   :  { %v91_v13 = vmul.f32 %v538_v5, %v538_v5  ;;  %v554_v14 = vld [vmem:[#allocation2] sm:$0xff]  ;;  %v84_v16 = vadd.f32 %v83_v7, %v82_v6  ;;  %v93_v17 = vmul.f32 %v544_v9, %v544_v9  ;;  %v560_v18 = vld [vmem:[#allocation2 + $0x8] sm:$0xff]  ;;  %v562_v19 = vld [vmem:[#allocation2 + $0x10] sm:$0xff]  ;;  %v569_v22 = vsub.f32 0.0, %v538_v5 }
  0x39   :  { %v564_v20 = vld [vmem:[#allocation2 + $0x18] sm:$0xff]  ;;  %v130_v21 = vmul.f32 %v554_v14, %v530_v0  ;;  %v95_v23 = vmul.f32 %v546_v10, %v546_v10  ;;  %v131_v24 = vmul.f32 %v560_v18, %v63_v1  ;;  %v133_v25 = vmul.f32 %v562_v19, %v532_v2  ;;  %v594_v39 = vld [vmem:[#allocation2 + $0x20] sm:$0xff]  ;;  %v596_v40 = vld [vmem:[#allocation2 + $0x28] sm:$0xff] }
  0x3a   :  { %v137_v26 = vmul.f32 %v554_v14, %v63_v1  ;;  %v86_v27 = vadd.f32 %v85_v8, %v84_v16  ;;  %v579_v28 = vmul.f32 %v564_v20, %v534_v3  ;;  %v138_v29 = vmul.f32 %v560_v18, %v530_v0  ;;  %v604_v46 = vld [vmem:[#allocation2 + $0x30] sm:$0xff]  ;;  %v611_v55 = vld [vmem:[#allocation2 + $0x38] sm:$0xff] }
  0x3b   :  { %v140_v30 = vmul.f32 %v562_v19, %v534_v3  ;;  %v132_v31 = vsub.f32 %v130_v21, %v131_v24  ;;  %v144_v32 = vmul.f32 %v554_v14, %v532_v2  ;;  %v145_v33 = vmul.f32 %v562_v19, %v530_v0 }
  0x3c   :  { %v147_v34 = vmul.f32 %v564_v20, %v63_v1  ;;  %v88_v35 = vadd.f32 %v87_v11, %v86_v27  ;;  %v139_v36 = vadd.f32 %v138_v29, %v137_v26  ;;  %v142_v37 = vmul.f32 %v564_v20, %v532_v2 }
  0x3d   :  { %v151_v38 = vmul.f32 %v554_v14, %v534_v3  ;;  %v134_v41 = vsub.f32 %v132_v31, %v133_v25  ;;  %v146_v42 = vadd.f32 %v145_v33, %v144_v32  ;;  %v600_v43 = vmul.f32 %v560_v18, %v534_v3 }
  0x3e   :  { %v152_v44 = vmul.f32 %v564_v20, %v530_v0  ;;  %v90_v45 = vadd.f32 %v89_v12, %v88_v35  ;;  %v141_v47 = vadd.f32 %v140_v30, %v139_v36  ;;  %v154_v48 = vmul.f32 %v560_v18, %v532_v2  ;;  %v639_v35 = vld [vmem:[#allocation4] sm:$0xff] }
  0x3f   :  { %v159_v49 = vsub.f32 0.0, %v544_v9  ;;  %v148_v50 = vadd.f32 %v147_v34, %v146_v42  ;;  %v156_v52 = vmul.f32 %v562_v19, %v63_v1  ;;  %v160_v53 = vsub.f32 0.0, %v546_v10 }
  0x40   :  { %v153_v51 = vadd.f32 %v152_v44, %v151_v38  ;;  %v92_v54 = vadd.f32 %v91_v13, %v90_v45  ;;  %v136_v56 = vsub.f32 %v134_v41, %v579_v28  ;;  %v161_v57 = vmul.f32 %v594_v39, %v536_v4 }
  0x41   :  { %v162_v58 = vmul.f32 %v569_v22, %v596_v40  ;;  %v143_v59 = vsub.f32 %v141_v47, %v142_v37  ;;  %v150_v60 = vsub.f32 %v148_v50, %v600_v43  ;;  %v164_v61 = vmul.f32 %v159_v49, %v604_v46  ;;  %v641_v43 = vld [vmem:[#allocation4 + $0x8] sm:$0xff] }
  0x42   :  { %v166_v62 = vmul.f32 %v160_v53, %v611_v55  ;;  %v94_v63 = vadd.f32 %v93_v17, %v92_v54  ;;  %v168_v6 = vmul.f32 %v596_v40, %v536_v4  ;;  %v169_v7 = vmul.f32 %v569_v22, %v594_v39 }
  0x43   :  { %v163_v1 = vsub.f32 %v161_v57, %v162_v58  ;;  %v155_v8 = vadd.f32 %v154_v48, %v153_v51  ;;  %v171_v11 = vmul.f32 %v159_v49, %v611_v55  ;;  %v173_v12 = vmul.f32 %v160_v53, %v604_v46 }
  0x44   :  { %v175_v13 = vmul.f32 %v604_v46, %v536_v4  ;;  %v96_v16 = vadd.f32 %v95_v23, %v94_v63  ;;  %v170_v24 = vadd.f32 %v169_v7, %v168_v6  ;;  %v176_v17 = vmul.f32 %v159_v49, %v594_v39 }
  0x45   :  { %v165_v21 = vsub.f32 %v163_v1, %v164_v61  ;;  %v178_v25 = vmul.f32 %v160_v53, %v596_v40  ;;  %v180_v26 = vmul.f32 %v569_v22, %v611_v55  ;;  %v182_v27 = vmul.f32 %v611_v55, %v536_v4 }
  0x46   :  { %v183_v28 = vmul.f32 %v160_v53, %v594_v39  ;;  %vm97_vm0 = vcmp.gt.f32.partialorder %v96_v16, 0.0  ;;  %v172_v30 = vadd.f32 %v171_v11, %v170_v24  ;;  %v177_v31 = vadd.f32 %v176_v17, %v175_v13 }
  0x47   :  { %v167_v29 = vsub.f32 %v165_v21, %v166_v62  ;;  %v157_v32 = vsub.f32 %v155_v8, %v156_v52  ;;  %v185_v33 = vmul.f32 %v569_v22, %v604_v46  ;;  %v187_v34 = vmul.f32 %v159_v49, %v596_v40  ;;  %v654_v52 = vld [vmem:[#allocation4 + $0x10] sm:$0xff] }
  0x48   :  { %v184_v23 = vadd.f32 %v183_v28, %v182_v27  ;;  %v98_v36 = vsel %vm97_vm0, %v96_v16, 1.0  ;;  %v174_v37 = vsub.f32 %v172_v30, %v173_v12  ;;  %v179_v38 = vadd.f32 %v178_v25, %v177_v31 }
  0x49   :  { %v189_v41 = vsub.f32 %v136_v56, %v167_v29  ;;  %v215_v44 = vmul.f32 %v554_v14, %v536_v4  ;;  %v216_v45 = vmul.f32 %v560_v18, %v538_v5  ;;  %v218_v22 = vmul.f32 %v562_v19, %v544_v9 }
  0x4a   :  { %v186_v42 = vadd.f32 %v185_v33, %v184_v23  ;;  %v181_v47 = vsub.f32 %v179_v38, %v180_v26  ;;  %v190_v48 = vsub.f32 %v143_v59, %v174_v37  ;;  %v652_v50 = vmul.f32 %v564_v20, %v546_v10  ;;  %v661_v59 = vld [vmem:[#allocation4 + $0x18] sm:$0xff] }
  0x4b   :  { %v194_v49 = vmul.f32 %v639_v35, %v189_v41  ;;  %v217_v53 = vsub.f32 %v215_v44, %v216_v45  ;;  %v222_v54 = vmul.f32 %v560_v18, %v536_v4  ;;  %v223_v56 = vmul.f32 %v554_v14, %v538_v5 }
  0x4c   :  { %v188_v51 = vsub.f32 %v186_v42, %v187_v34  ;;  %v191_v57 = vsub.f32 %v150_v60, %v181_v47  ;;  %v199_v58 = vmul.f32 %v641_v43, %v190_v48  ;;  %v225_v61 = vmul.f32 %v564_v20, %v544_v9 }
  0x4d   :  { %v667_v62 = vmul.f32 %v562_v19, %v546_v10  ;;  %v219_v1 = vsub.f32 %v217_v53, %v218_v22  ;;  %v224_v6 = vadd.f32 %v223_v56, %v222_v54  ;;  %v229_v7 = vmul.f32 %v562_v19, %v536_v4 }
  0x4e   :  { %v192_v63 = vsub.f32 %v157_v32, %v188_v51  ;;  %v200_v8 = vadd.f32 %v199_v58, %v194_v49  ;;  %v205_v60 = vmul.f32 %v654_v52, %v191_v57  ;;  %v230_v11 = vmul.f32 %v554_v14, %v544_v9 }
  0x4f   :  { %v232_v12 = vmul.f32 %v560_v18, %v546_v10  ;;  %367 = vrsqrt.f32 %v98_v36  ;;  %v226_v16 = vadd.f32 %v225_v61, %v224_v6  ;;  %v234_v21 = vmul.f32 %v564_v20, %v538_v5 }
  0x50   :  { %v211_v13 = vmul.f32 %v661_v59, %v192_v63  ;;  %v206_v24 = vadd.f32 %v205_v60, %v200_v8  ;;  %v231_v17 = vadd.f32 %v230_v11, %v229_v7  ;;  %v236_v25 = vmul.f32 %v564_v20, %v536_v4 }
  0x51   :  { %v237_v26 = vmul.f32 %v554_v14, %v546_v10  ;;  %v221_v27 = vsub.f32 %v219_v1, %v652_v50  ;;  %v228_v28 = vsub.f32 %v226_v16, %v667_v62  ;;  %v239_v29 = vmul.f32 %v562_v19, %v538_v5 }
  0x52   :  { %v244_v30 = vsub.f32 0.0, %v532_v2  ;;  %v233_v31 = vadd.f32 %v232_v12, %v231_v17  ;;  %v241_v23 = vmul.f32 %v560_v18, %v544_v9  ;;  %v245_v33 = vsub.f32 0.0, %v534_v3 }
  0x53   :  { %v238_v32 = vadd.f32 %v237_v26, %v236_v25  ;;  %v246_v4 = vmul.f32 %v594_v39, %v530_v0  ;;  %v247_v10 = vmul.f32 %v556_v15, %v596_v40  ;;  %v253_v5 = vmul.f32 %v556_v15, %v594_v39  ;;  %v291_v25 = vld [vmem:[#allocation4 + $0x30] sm:$0xff] }
  0x54   :  { %v249_v34 = vmul.f32 %v244_v30, %v604_v46  ;;  %v212_v36 = vadd.f32 %v211_v13, %v206_v24  ;;  %v235_v2 = vsub.f32 %v233_v31, %v234_v21  ;;  %v254_v38 = vmul.f32 %v596_v40, %v530_v0  ;;  %v285_v13 = vld [vmem:[#allocation4 + $0x28] sm:$0xff]  ;;  %v297_v31 = vld [vmem:[#allocation4 + $0x38] sm:$0xff] }
  0x55   :  { %v240_v37 = vadd.f32 %v239_v29, %v238_v32  ;;  %v248_v9 = vsub.f32 %v246_v4, %v247_v10  ;;  %v251_v3 = vmul.f32 %v245_v33, %v611_v55  ;;  %v256_v41 = vmul.f32 %v245_v33, %v604_v46 }
  0x56   :  { %v260_v42 = vmul.f32 %v244_v30, %v594_v39  ;;  %v255_v44 = vadd.f32 %v254_v38, %v253_v5  ;;  %v258_v45 = vmul.f32 %v244_v30, %v611_v55  ;;  %v261_v22 = vmul.f32 %v604_v46, %v530_v0 }
  0x57   :  { %v263_v47 = vmul.f32 %v556_v15, %v611_v55  ;;  %v250_v48 = vsub.f32 %v248_v9, %v249_v34  ;;  %v265_v49 = vmul.f32 %v245_v33, %v596_v40  ;;  %v267_v50 = vmul.f32 %v245_v33, %v594_v39 }
  0x58   :  { %v268_v51 = vmul.f32 %v611_v55, %v530_v0  ;;  %v257_v53 = vadd.f32 %v256_v41, %v255_v44  ;;  %v262_v54 = vadd.f32 %v261_v22, %v260_v42  ;;  %v270_v56 = vmul.f32 %v244_v30, %v596_v40  ;;  %v279_v0 = vld [vmem:[#allocation4 + $0x20] sm:$0xff] }
  0x59   :  { %v272_v57 = vmul.f32 %v556_v15, %v604_v46  ;;  %v368_v58 = vpop.eup %367  ;;  %v252_v61 = vsub.f32 %v250_v48, %v251_v3  ;;  %v115_v63 = vmul.f32 %v554_v14, %v554_v14  ;;  %v116_v1 = vmul.f32 %v560_v18, %v560_v18 }
  0x5a   :  { %v269_v62 = vadd.f32 %v268_v51, %v267_v50  ;;  %v242_v6 = vsub.f32 %v240_v37, %v241_v23  ;;  %v259_v7 = vsub.f32 %v257_v53, %v258_v45  ;;  %v264_v8 = vadd.f32 %v263_v47, %v262_v54 }
  0x5b   :  { %v118_v60 = vmul.f32 %v562_v19, %v562_v19  ;;  %v274_v12 = vadd.f32 %v252_v61, %v221_v27  ;;  %v117_v15 = vadd.f32 %v116_v1, %v115_v63  ;;  %v120_v16 = vmul.f32 %v564_v20, %v564_v20 }
  0x5c   :  { %v271_v11 = vadd.f32 %v270_v56, %v269_v62  ;;  %v266_v21 = vsub.f32 %v264_v8, %v265_v49  ;;  %v275_v24 = vadd.f32 %v259_v7, %v228_v28  ;;  %v122_v26 = vmul.f32 %v594_v39, %v594_v39 }
  0x5d   :  { %v280_v17 = vmul.f32 %v279_v0, %v274_v12  ;;  %v119_v18 = vadd.f32 %v118_v60, %v117_v15  ;;  %v124_v23 = vmul.f32 %v596_v40, %v596_v40  ;;  %v126_v10 = vmul.f32 %v604_v46, %v604_v46 }
  0x5e   :  { %v273_v14 = vsub.f32 %v271_v11, %v272_v57  ;;  %v276_v29 = vadd.f32 %v266_v21, %v235_v2  ;;  %v286_v30 = vmul.f32 %v285_v13, %v275_v24  ;;  %v128_v39 = vmul.f32 %v611_v55, %v611_v55 }
  0x5f   :  { %v281_v32 = vadd.f32 %v280_v17, %v212_v36  ;;  %v121_v27 = vadd.f32 %v120_v16, %v119_v18  ;;  %v195_v36 = vmul.f32 %v639_v35, %v639_v35  ;;  %v201_v9 = vmul.f32 %v641_v43, %v641_v43 }
  0x60   :  { %v277_v19 = vadd.f32 %v273_v14, %v242_v6  ;;  %v292_v33 = vmul.f32 %v291_v25, %v276_v29  ;;  %v207_v46 = vmul.f32 %v654_v52, %v654_v52  ;;  %v213_v55 = vmul.f32 %v661_v59, %v661_v59  ;;  %v313_v52 = vld [vmem:[%s753_s3] sm:$0xff] }
  0x61   :  { %v287_v20 = vadd.f32 %v286_v30, %v281_v32  ;;  %v123_v28 = vadd.f32 %v122_v26, %v121_v27  ;;  %v282_v45 = vmul.f32 %v279_v0, %v279_v0  ;;  %v288_v22 = vmul.f32 %v285_v13, %v285_v13 }
  0x62   :  { %v298_v4 = vmul.f32 %v297_v31, %v277_v19  ;;  %v294_v48 = vmul.f32 %v291_v25, %v291_v25  ;;  %v300_v50 = vmul.f32 %v297_v31, %v297_v31  ;;  %v324_v7 = vand.u32 2147483647, %v313_v52 }
  0x63   :  { %v293_v34 = vadd.f32 %v292_v33, %v287_v20  ;;  %v125_v5 = vadd.f32 %v124_v23, %v123_v28 }
  0x65   :  { %v299_v2 = vadd.f32 %v298_v4, %v293_v34  ;;  %v127_v37 = vadd.f32 %v126_v10, %v125_v5 }
  0x67   :  { %v302_v38 = vmul.f32 %v368_v58, %v299_v2  ;;  %v129_v40 = vadd.f32 %v128_v39, %v127_v37 }
  0x69   :  { %v304_v3 = vsel %vm303_vm1, %v302_v38, 0.0  ;;  %v196_v41 = vadd.f32 %v195_v36, %v129_v40 }
  0x6a   :  { %305 = vadd.xlane.f32.xlu0 %v304_v3 }
  0x6b   :  { %v202_v42 = vadd.f32 %v201_v9, %v196_v41 }
  0x6d   :  { %v208_v44 = vadd.f32 %v207_v46, %v202_v42 }
  0x6f   :  { %v214_v35 = vadd.f32 %v213_v55, %v208_v44 }
  0x71   :  { %v283_v47 = vadd.f32 %v282_v45, %v214_v35 }
  0x73   :  { %v289_v49 = vadd.f32 %v288_v22, %v283_v47 }
  0x75   :  { %v295_v43 = vadd.f32 %v294_v48, %v289_v49 }
  0x77   :  { %v301_v51 = vadd.f32 %v300_v50, %v295_v43 }
  0x79   :  { %v308_v53 = vsel %vm303_vm1, %v301_v51, 0.0 }
  0x7a   :  { %309 = vadd.xlane.f32.xlu0 %v308_v53 }
  0xf7   :  { %v306_v54 = vpop.xlane.xlu0 %305 }
  0xf8   :  { %v312_v56 = vsub.f32 0.0, %v306_v54 }
  0xfa   :  { %v314_v59 = vmul.f32 %v313_v52, %v312_v56 }
  0xfc   :  { %v316_v57 = vand.u32 2147483647, %v314_v59  ;;  %v315_v8 = vmax.f32 %v314_v59, 0.0 }
  0xfe   :  { %v317_v58 = vsub.f32 0.0, %v316_v57 }
 0x100   :  { %v318_v61 = vmul.f32 1.442695, %v317_v58 }
 0x102   :  { %369 = vpow2.f32 %v318_v61 }
 0x107   :  { %v310_v62 = vpop.xlane.xlu0 %309 }
 0x108   :  { %330 = vst.msk [vmem:[%s755_s5] sm:$0xff] %vm328_vm2, %v310_v62 }
 0x10c   :  { %v370_v63 = vpop.eup %369 }
 0x10d   :  { %v320_v1 = vadd.f32 1.0, %v370_v63 }
 0x10f   :  { %371 = vlog2.f32 %v320_v1 }
 0x119   :  { %v372_v6 = vpop.eup %371 }
 0x11a   :  { %v322_v0 = vmul.f32 0.6931472, %v372_v6 }
 0x11c   :  { %v323_v60 = vadd.f32 %v322_v0, %v315_v8 }
 0x11e   :  { %v325_v11 = vmul.f32 %v324_v7, %v323_v60 }
 0x120   :  { %329 = vst.msk [vmem:[%s754_s4] sm:$0xff] %vm328_vm2, %v325_v11 }
 0x121   :  { %339 = vsyncpa [#allocation3], 1 }
 0x122   :  { %340 = vsyncpa [#allocation5], 1 }

</bundles_post_ra>
